<compile_context>
chip_gen: v5e
topology: v5e:2x2
jax: 0.10.0
libtpu: 0.0.40
codegen_flags: <defaults>
</compile_context>

<pallas_src>
import functools

import jax
import jax.numpy as jnp
from jax.experimental import pallas as pl
from jax.experimental.pallas import tpu as pltpu


def _ls_ce_kernel(x_ref, tgt_ref, out_ref, *, smoothing, inv_temperature, n_rows):
    i = pl.program_id(0)

    @pl.when(i == 0)
    def _init():
        out_ref[...] = jnp.zeros_like(out_ref)

    x = x_ref[...].astype(jnp.float32)
    if inv_temperature != 1.0:  # static Python check: skip multiply when T == 1
        x = x * inv_temperature

    tn, c = x.shape

    # Row-wise stats in a single pass over the tile.
    m = jnp.max(x, axis=-1, keepdims=True)                              # (tn, 1)
    lse = jnp.log(jnp.sum(jnp.exp(x - m), axis=-1, keepdims=True))      # (tn, 1)
    sum_x = jnp.sum(x, axis=-1, keepdims=True)                          # (tn, 1)

    # Gather x at the target index via a one-hot mask (TPU-friendly).
    cols = jax.lax.broadcasted_iota(jnp.int32, (tn, c), 1)              # (tn, c)
    onehot = cols == tgt_ref[...]                                       # (tn, c)
    x_tgt = jnp.sum(jnp.where(onehot, x, 0.0), axis=-1, keepdims=True)  # (tn, 1)

    # loss_i = (1-s)*(m+lse-x_tgt) + s*(m+lse-sum_x/C), re-associated:
    loss = (m + lse) - (1.0 - smoothing) * x_tgt - (smoothing / c) * sum_x

    # Mask rows past the true batch size (ragged last tile reads padding).
    row = i * tn + jax.lax.broadcasted_iota(jnp.int32, (tn, 1), 0)
    loss = jnp.where(row < n_rows, loss, 0.0)

    out_ref[...] += jnp.sum(loss, axis=0, keepdims=True)                # (1, 1)

    @pl.when(i == pl.num_programs(0) - 1)
    def _finalize():
        out_ref[...] = out_ref[...] * (1.0 / n_rows)


def label_smoothing_ce_loss(x, target, smoothing=0.1, temperature=1.0, tile_n=None):
    """x: (N, C) float logits, target: (N,) int labels -> scalar f32 loss."""
    n, c = x.shape
    tgt2d = target.astype(jnp.int32).reshape(n, 1)

    if tile_n is None:
        # Size the row tile so the double-buffered input tile plus the
        # compiler's (tile_n, C) f32 temporaries stay well inside scoped VMEM
        # (conservative enough for v7x's smaller VMEM as well).
        bytes_per_row = c * x.dtype.itemsize + 4 * c  # input row + f32 temps
        tile_n = max(8, min(1024, (24 * 1024 * 1024) // (2 * bytes_per_row)))
    # Keep the tile a multiple of 8 sublanes and no larger than needed.
    tile_n = max(8, min(tile_n, ((n + 7) // 8) * 8))
    tile_n = (tile_n // 8) * 8

    grid = (pl.cdiv(n, tile_n),)

    kernel = functools.partial(
        _ls_ce_kernel,
        smoothing=float(smoothing),
        inv_temperature=1.0 / float(temperature),
        n_rows=n,
    )

    tile_bytes = tile_n * c * max(4, x.dtype.itemsize)
    vmem_limit = int(min(100 * 1024 * 1024, max(16 * 1024 * 1024, 6 * tile_bytes)))

    # TODO(synk): for very large vocabularies also tile the class axis with an
    # online (flash-style) log-sum-exp, and on v7x emit per-tile partial sums
    # with a 'parallel' grid so both TensorCores stream rows concurrently.
    out = pl.pallas_call(
        kernel,
        out_shape=jax.ShapeDtypeStruct((1, 1), jnp.float32),
        grid_spec=pltpu.PrefetchScalarGridSpec(
            num_scalar_prefetch=0,
            grid=grid,
            in_specs=[
                pl.BlockSpec((tile_n, c), lambda i: (i, 0)),  # logits row-tile
                pl.BlockSpec((tile_n, 1), lambda i: (i, 0)),  # target row-tile
            ],
            out_specs=pl.BlockSpec((1, 1), lambda i: (0, 0)),  # resident accumulator
        ),
        compiler_params=pltpu.CompilerParams(
            dimension_semantics=("arbitrary",),  # reduction into one output block
            vmem_limit_bytes=vmem_limit,
        ),
    )(x, tgt2d)
    return out[0, 0]


if __name__ == "__main__":
    key = jax.random.PRNGKey(0)
    kx, kt = jax.random.split(key)

    # Small but representative shapes: C is a multiple of 128 (lane-dense),
    # N is NOT a multiple of the tile so the ragged-tile masking is exercised.
    N, C = 20, 128
    x = jax.random.normal(kx, (N, C), dtype=jnp.float32)
    target = jax.random.randint(kt, (N,), 0, C, dtype=jnp.int32)

    def ref_loss(x, target, smoothing, temperature):
        logp = jax.nn.log_softmax(x.astype(jnp.float32) / temperature, axis=-1)
        nll = -jnp.take_along_axis(logp, target[:, None], axis=-1)[:, 0]
        smooth = -jnp.mean(logp, axis=-1)
        return jnp.mean((1.0 - smoothing) * nll + smoothing * smooth)

    # Case 1: temperature == 1.0 (scaling multiply skipped), multi-tile grid
    # with a ragged last tile (3 grid steps of 8 rows over N=20).
    loss1 = label_smoothing_ce_loss(x, target, smoothing=0.1, temperature=1.0, tile_n=8)
    jax.block_until_ready(loss1)
    ref1 = ref_loss(x, target, 0.1, 1.0)
    assert jnp.allclose(loss1, ref1, atol=1e-5, rtol=1e-5), (loss1, ref1)

    # Case 2: temperature != 1.0 and auto-sized tile (single grid step).
    loss2 = label_smoothing_ce_loss(x, target, smoothing=0.2, temperature=2.0)
    jax.block_until_ready(loss2)
    ref2 = ref_loss(x, target, 0.2, 2.0)
    assert jnp.allclose(loss2, ref2, atol=1e-5, rtol=1e-5), (loss2, ref2)

    print("KERNEL_OK")
</pallas_src>

<mosaic_0001>
module attributes {stable_mosaic.version = 11 : i64} {
  func.func @_ls_ce_kernel(%arg0: i32, %arg1: memref<8x128xf32, #tpu.memory_space<vmem>>, %arg2: memref<8x1xi32, #tpu.memory_space<vmem>>, %arg3: memref<1x1xf32, #tpu.memory_space<vmem>>) attributes {dimension_semantics = [#tpu.dimension_semantics<arbitrary>], iteration_bounds = array<i64: 3>, scalar_prefetch = 0 : i64, scratch_operands = 0 : i64, tpu.core_type = #tpu.core_type<tc>, window_params = [{transform_indices = @transform_0, window_bounds = array<i64: 8, 128>}, {transform_indices = @transform_1, window_bounds = array<i64: 8, 1>}, {pipeline_mode = #tpu.pipeline_mode<synchronous>, transform_indices = @transform_2, window_bounds = array<i64: 1, 1>}]} {
    %c0_i32 = arith.constant 0 : i32
    %0 = arith.cmpi eq, %arg0, %c0_i32 : i32
    %1 = arith.extui %0 : i1 to i32
    %c0_i32_0 = arith.constant 0 : i32
    %2 = arith.cmpi ne, %1, %c0_i32_0 : i32
    scf.if %2 {
      %cst_17 = arith.constant 0.000000e+00 : f32
      %45 = vector.broadcast %cst_17 : f32 to vector<1x1xf32>
      %c0_18 = arith.constant 0 : index
      %c0_19 = arith.constant 0 : index
      %46 = vector.load %arg3[%c0_18, %c0_19] : memref<1x1xf32, #tpu.memory_space<vmem>>, vector<1x1xf32>
      tpu.vector_store %arg3[%c0_18, %c0_19], %45 {strides = array<i32>} : memref<1x1xf32, #tpu.memory_space<vmem>>, vector<1x1xf32>,
    } else {
    }
    %c0 = arith.constant 0 : index
    %c0_1 = arith.constant 0 : index
    %3 = vector.load %arg1[%c0, %c0_1] : memref<8x128xf32, #tpu.memory_space<vmem>>, vector<8x128xf32>
    %cst = arith.constant dense<0xFF800000> : vector<8xf32>
    %4 = vector.multi_reduction <maximumf>, %3, %cst [1] : vector<8x128xf32> to vector<8xf32>
    %5 = vector.shape_cast %4 : vector<8xf32> to vector<8x1xf32>
    %6 = vector.broadcast %5 : vector<8x1xf32> to vector<8x128xf32>
    %7 = arith.subf %3, %6 : vector<8x128xf32>
    %8 = math.exp %7 : vector<8x128xf32>
    %cst_2 = arith.constant dense<0.000000e+00> : vector<8xf32>
    %9 = vector.multi_reduction <add>, %8, %cst_2 [1] : vector<8x128xf32> to vector<8xf32>
    %10 = vector.shape_cast %9 : vector<8xf32> to vector<8x1xf32>
    %11 = math.log %10 : vector<8x1xf32>
    %cst_3 = arith.constant dense<0.000000e+00> : vector<8xf32>
    %12 = vector.multi_reduction <add>, %3, %cst_3 [1] : vector<8x128xf32> to vector<8xf32>
    %13 = vector.shape_cast %12 : vector<8xf32> to vector<8x1xf32>
    %14 = tpu.iota {dimensions = array<i32: 1>} : vector<8x128xi32>
    %c0_4 = arith.constant 0 : index
    %c0_5 = arith.constant 0 : index
    %15 = vector.load %arg2[%c0_4, %c0_5] : memref<8x1xi32, #tpu.memory_space<vmem>>, vector<8x1xi32>
    %16 = vector.broadcast %15 : vector<8x1xi32> to vector<8x128xi32>
    %17 = arith.cmpi eq, %14, %16 : vector<8x128xi32>
    %cst_6 = arith.constant 0.000000e+00 : f32
    %18 = vector.broadcast %cst_6 : f32 to vector<8x128xf32>
    %19 = arith.select %17, %3, %18 : vector<8x128xi1>, vector<8x128xf32>
    %cst_7 = arith.constant dense<0.000000e+00> : vector<8xf32>
    %20 = vector.multi_reduction <add>, %19, %cst_7 [1] : vector<8x128xf32> to vector<8xf32>
    %21 = vector.shape_cast %20 : vector<8xf32> to vector<8x1xf32>
    %22 = arith.addf %5, %11 : vector<8x1xf32>
    %cst_8 = arith.constant 0.899999976 : f32
    %23 = vector.broadcast %cst_8 : f32 to vector<8x1xf32>
    %24 = arith.mulf %23, %21 : vector<8x1xf32>
    %25 = arith.subf %22, %24 : vector<8x1xf32>
    %cst_9 = arith.constant 7.812500e-04 : f32
    %26 = vector.broadcast %cst_9 : f32 to vector<8x1xf32>
    %27 = arith.mulf %26, %13 : vector<8x1xf32>
    %28 = arith.subf %25, %27 : vector<8x1xf32>
    %c8_i32 = arith.constant 8 : i32
    %29 = arith.muli %arg0, %c8_i32 : i32
    %30 = tpu.iota {dimensions = array<i32: 0>} : vector<8x1xi32>
    %31 = vector.broadcast %29 : i32 to vector<8x1xi32>
    %32 = arith.addi %31, %30 : vector<8x1xi32>
    %c20_i32 = arith.constant 20 : i32
    %33 = vector.broadcast %c20_i32 : i32 to vector<8x1xi32>
    %34 = arith.cmpi slt, %32, %33 : vector<8x1xi32>
    %cst_10 = arith.constant 0.000000e+00 : f32
    %35 = vector.broadcast %cst_10 : f32 to vector<8x1xf32>
    %36 = arith.select %34, %28, %35 : vector<8x1xi1>, vector<8x1xf32>
    %c0_11 = arith.constant 0 : index
    %c0_12 = arith.constant 0 : index
    %37 = vector.load %arg3[%c0_11, %c0_12] : memref<1x1xf32, #tpu.memory_space<vmem>>, vector<1x1xf32>
    %cst_13 = arith.constant dense<0.000000e+00> : vector<1xf32>
    %38 = vector.multi_reduction <add>, %36, %cst_13 [0] : vector<8x1xf32> to vector<1xf32>
    %39 = vector.shape_cast %38 : vector<1xf32> to vector<1x1xf32>
    %40 = arith.addf %37, %39 : vector<1x1xf32>
    %c0_14 = arith.constant 0 : index
    %c0_15 = arith.constant 0 : index
    %41 = vector.load %arg3[%c0_14, %c0_15] : memref<1x1xf32, #tpu.memory_space<vmem>>, vector<1x1xf32>
    tpu.vector_store %arg3[%c0_14, %c0_15], %40 {strides = array<i32>} : memref<1x1xf32, #tpu.memory_space<vmem>>, vector<1x1xf32>,
    %c2_i32 = arith.constant 2 : i32
    %42 = arith.cmpi eq, %arg0, %c2_i32 : i32
    %43 = arith.extui %42 : i1 to i32
    %c0_i32_16 = arith.constant 0 : i32
    %44 = arith.cmpi ne, %43, %c0_i32_16 : i32
    scf.if %44 {
      %c0_17 = arith.constant 0 : index
      %c0_18 = arith.constant 0 : index
      %45 = vector.load %arg3[%c0_17, %c0_18] : memref<1x1xf32, #tpu.memory_space<vmem>>, vector<1x1xf32>
      %cst_19 = arith.constant 5.000000e-02 : f32
      %46 = vector.broadcast %cst_19 : f32 to vector<1x1xf32>
      %47 = arith.mulf %45, %46 : vector<1x1xf32>
      %c0_20 = arith.constant 0 : index
      %c0_21 = arith.constant 0 : index
      %48 = vector.load %arg3[%c0_20, %c0_21] : memref<1x1xf32, #tpu.memory_space<vmem>>, vector<1x1xf32>
      tpu.vector_store %arg3[%c0_20, %c0_21], %47 {strides = array<i32>} : memref<1x1xf32, #tpu.memory_space<vmem>>, vector<1x1xf32>,
    } else {
    }
    return
  }
  func.func @transform_0(%arg0: i32) -> (i32, i32) {
    %c0_i32 = arith.constant 0 : i32
    %c0_i32_0 = arith.constant 0 : i32
    return %arg0, %c0_i32 : i32, i32
  }
  func.func @transform_1(%arg0: i32) -> (i32, i32) {
    %c0_i32 = arith.constant 0 : i32
    %c0_i32_0 = arith.constant 0 : i32
    return %arg0, %c0_i32 : i32, i32
  }
  func.func @transform_2(%arg0: i32) -> (i32, i32) {
    %c0_i32 = arith.constant 0 : i32
    %c0_i32_0 = arith.constant 0 : i32
    %c0_i32_1 = arith.constant 0 : i32
    return %c0_i32, %c0_i32_0 : i32, i32
  }
}

</mosaic_0001>

<bundles_post_ra>
// kernel: tpu_custom_call.1
= control target key start
LH: loop header
LB: loop body
LE: loop exit
PB: predicated region body
PF: predicated region fallthrough
CT: control target
= control target key end

     0   :  { %7 = vsyncpa [#allocation3], 0  ;;  %s354_s9 = smov 0   ;;  %s382_s0 = inlined_call_operand.vmem [shape: f32[20,128], index: 0, kind: input, shape index: {}]   ;;  %s383_s1 = inlined_call_operand.vmem [shape: s32[20,1], index: 1, kind: input, shape index: {}]   ;;  %s384_s2 = inlined_call_operand.hbm [shape: f32[1,1], index: 2, kind: output, shape index: {}]  }
   0x1 LB: > { %s360_s10 = sadd.s32 4294967295, %s334_s9   ;;  %p264_p0 = scmp.ge.s32.totalorder %s334_s9, 1  ;;  %s334_s9 = sphi %s354_s9, %s13_s9  }
   0x2   : > { %p116_p1 = scmp.lt.s32.totalorder %s334_s9, 4 }
   0x4   : > { %p117_p2 = pnand %p264_p0, %p116_p1 }
   0x5   : > { %p136_p3 = scmp.lt.s32.totalorder (!%p117_p2), %s360_s10, 2  ;;  %p267_p4 = scmp.ne.s32.totalorder (!%p117_p2), %s360_s10, 0 }
   0x6   : > { %120 = sbr.rel (%p117_p2) target bundleno = 310 (0x136), region = 28 }
   0xb   : > { %s137_s11 = scalar_select %p136_p3, %s360_s10, 2 }
   0xc   : > { %147 = sbr.rel (%p267_p4) target bundleno = 19 (0x13), region = 32 }
   0xd   : > { %s265_s12 = sshll.u32 %s137_s11, 3 }
   0xe   : > { %s139_s15 = scalar_lea.vmem %s382_s0, %s265_s12  ;;  %s143_s18 = scalar_lea.vmem %s383_s1, %s265_s12 }
  0x11   : > { %vm148_vm0 = vcmask 0   ;;  %v336_v0 = vmov 0.0  }
  0x12   : > { %149 = vst.msk [vmem:[#allocation2] sm:$0x1] %vm148_vm0, %v336_v0 }
  0x13 PF: > { %v150_v1 = vld [vmem:[%s139_s15] sm:$0xff]  ;;  %v337_v2 = vmov 0   ;;  %v162_v8 = vlaneseq  ;;  %s268_s19 = sshll.u32 %s360_s10, 3  ;;  %vm192_vm3 = vcmask 0   ;;  %p269_p5 = scmp.ne.s32.totalorder %s360_s10, 2 }
  0x14   : > { %151 = vmax.xlane.f32.xlu0 %v150_v1  ;;  %160 = vadd.xlane.f32.xlu2 %v150_v1  ;;  %v164_v3 = vld [vmem:[%s143_s18] sm:$0xff]  ;;  %v180_v15 = vstv %s268_s19 }
  0x15   : > { %291 = vset.pattern.permute.xlu0 %v337_v2  ;;  %v163_v9 = vand.u32 127, %v162_v8  ;;  %v179_v13 = vshrl.u32 %v162_v8, 7 }
  0x17   : > { %v181_v20 = vadd.s32 %v180_v15, %v179_v13 }
  0x19   : > { %vm182_vm2 = vcmp.lt.s32.totalorder %v181_v20, 20  ;;  %v184_v31 = vld [vmem:[#allocation2] sm:$0x1] }
  0x28   : > { %166 = vperm.xlu0 %291, %v164_v3  }
  0x87   : > { %v152_v4 = vpop.xlane.xlu0 %151  ;;  %v161_v17 = vpop.xlane.xlu2 %160 }
  0x88   : > { %v153_v5 = vsub.f32 %v150_v1, %v152_v4  ;;  %v175_v22 = vmul.f32 0.00078125, %v161_v17 }
  0x8a   : > { %v154_v6 = vmul.f32 1.442695, %v153_v5 }
  0x8c   : > { %292 = vpow2.f32 %v154_v6 }
  0x92   : > { %v293_v7 = vpop.eup %292 }
  0x93   : > { %156 = vadd.xlane.f32.xlu1 %v293_v7 }
  0x9a   : > { %v167_v10 = vpop.permute.xlu0 %166 }
  0x9b   : > { %vm168_vm1 = vcmp.eq.s32.totalorder %v163_v9, %v167_v10 }
  0x9c   : > { %v169_v11 = vsel %vm168_vm1, %v150_v1, 0.0 }
  0x9d   : > { %170 = vadd.xlane.f32.xlu1 %v169_v11 }
 0x106   : > { %v157_v12 = vpop.xlane.xlu1 %156 }
 0x107   : > { %294 = vlog2.f32 %v157_v12 }
 0x10d   : > { %v295_v14 = vpop.eup %294 }
 0x10e   : > { %v159_v16 = vmul.f32 0.6931472, %v295_v14 }
 0x110   : > { %v172_v18 = vadd.f32 %v159_v16, %v152_v4  ;;  %v171_v19 = vpop.xlane.xlu1 %170 }
 0x111   : > { %v173_v21 = vmul.f32 0.9, %v171_v19 }
 0x113   : > { %v174_v23 = vsub.f32 %v172_v18, %v173_v21 }
 0x115   : > { %v176_v24 = vsub.f32 %v174_v23, %v175_v22 }
 0x117   : > { %v183_v25 = vsel %vm182_vm2, %v176_v24, 0.0 }
 0x118   : > { %v185_v26 = vrot.slane %v183_v25, 4 }
 0x11a   : > { %v186_v27 = vadd.f32 %v185_v26, %v183_v25 }
 0x11c   : > { %v187_v28 = vrot.slane %v186_v27, 2 }
 0x11e   : > { %v188_v29 = vadd.f32 %v187_v28, %v186_v27 }
 0x120   : > { %v189_v30 = vrot.slane %v188_v29, 1 }
 0x122   : > { %v190_v32 = vadd.f32 %v189_v30, %v188_v29  ;;  %197 = sbr.rel (%p269_p5) target bundleno = 305 (0x131), region = 36 }
 0x124   : > { %v191_v33 = vadd.f32 %v190_v32, %v184_v31 }
 0x126   : > { %193 = vst.msk [vmem:[#allocation2] sm:$0x1] %vm192_vm3, %v191_v33 }
 0x12d   : > { %v198_v34 = vld [vmem:[#allocation2] sm:$0x1] }
 0x12e   : > { %v199_v35 = vmul.f32 0.05, %v198_v34 }
 0x130   : > { %200 = vst.msk [vmem:[#allocation2] sm:$0x1] %vm192_vm3, %v199_v35 }
 0x131 PF: > { %p278_p6 = scmp.eq.s32.totalorder %s360_s10, 2  ;;  %s338_s20 = smov [#allocation2]  }
 0x132   : > { %s207_s21 = sshll.u32 %s338_s20, 4  ;;  %s209_s24 = sshll.u32 %s384_s2, 4  ;;  %s208_s21 = int_to_ptr.vmem [resolvable:$true] %s207_s21  ;;  %s210_s24 = int_to_ptr.hbm [resolvable:$true] %s209_s24 }
 0x133   : > { %275 = dma.vmem_to_hbm [thread:$0]  (%p278_p6), %s208_s21, 16, %s210_s24, [#allocation3]  }
 0x134   : > { %329 = dma.done.wait (%p278_p6), [#allocation3], 16  }
 0x135   : > { %331 = vsyncadd (%p278_p6), [#allocation3], 4294967280 }
 0x136 PF: > { %s13_s9 = sadd.s32 1, %s334_s9  }
 0x137   : > { %p10_p7 = scmp.ge.s32.totalorder %s13_s9, 5  }
 0x139   :  { %12 = sbr.rel (!%p10_p7) target bundleno = 1 (0x1), region = 66 }
 0x13e   :  { %223 = vsyncpa [#allocation3], 1 }
 0x13f   :  { %225 = vsyncpa [#allocation3 + $0x1], 1 }

</bundles_post_ra>
